<compile_context>
chip_gen: v6e
topology: v6e:2x2x1
jax: 0.10.0
libtpu: 0.0.40
codegen_flags: <defaults>
</compile_context>

<pallas_src>
import jax
import jax.numpy as jnp
from jax.experimental import pallas as pl
from jax.experimental.pallas import tpu as pltpu

IN_DIM = 768
N_CLS = 6
TEMP = 0.3
EPS = 1e-20


def _round_up(x, m):
    return ((x + m - 1) // m) * m


def latent_bert_kernel(img_ref, txt_ref, w_ref, b_ref, u_ref, out_ref):
    w = w_ref[...]          # (768, 12) fused [fc_a | fc_gt] weight, resident
    b = b_ref[...]          # (1, 12)   fused bias, f32

    # ---- fused classifiers: two MXU dots against one resident weight tile ----
    logits_img = jnp.dot(img_ref[...], w, preferred_element_type=jnp.float32) + b
    logits_txt = jnp.dot(txt_ref[...], w, preferred_element_type=jnp.float32) + b

    logits_a = logits_img[:, :N_CLS]      # fc_a(image)
    logits_gt = logits_txt[:, N_CLS:]     # fc_gt(text)

    # ---- branch 1: dis_image = softmax(fc_a(image)), exact ----
    m_a = jnp.max(logits_a, axis=1, keepdims=True)
    e_a = jnp.exp(logits_a - m_a)
    dis_img = e_a * pl.reciprocal(jnp.sum(e_a, axis=1, keepdims=True), approx=False)

    # ---- branch 2: dis_text forward value ----
    # st_gumbel_softmax(p, T) forward == one_hot(argmax(softmax((p+g)/T)))
    #                                 == one_hot(argmax(p+g))  (softmax & /T monotone)
    m_g = jnp.max(logits_gt, axis=1, keepdims=True)
    e_g = jnp.exp(logits_gt - m_g)
    p = e_g * pl.reciprocal(jnp.sum(e_g, axis=1, keepdims=True), approx=True)
    g = -jnp.log(-jnp.log(u_ref[...] + EPS) + EPS)
    score = p + g

    tb, c = score.shape
    iota = jax.lax.broadcasted_iota(jnp.int32, (tb, c), 1)
    row_max = jnp.max(score, axis=1, keepdims=True)
    # first-occurrence tie break, matching torch.max(dim=1)[1]
    first_idx = jnp.min(jnp.where(score >= row_max, iota, c), axis=1, keepdims=True)
    dis_txt = (iota == first_idx).astype(jnp.float32)

    # fused output slab: cols 0:6 = dis_image, cols 6:12 = dis_text
    out_ref[:, :N_CLS] = dis_img
    out_ref[:, N_CLS:] = dis_txt


def latent_bert_t(image, text, wa, ba, wgt, bgt, u, *,
                  block_b=1024, input_dtype=jnp.bfloat16):
    """Forward pass of Latent_Bert_T. `u` are the uniform samples for the gumbel noise."""
    B, D = image.shape

    # fuse the two classifier params: columns 0:6 = fc_a, 6:12 = fc_gt
    w = jnp.concatenate([wa, wgt], axis=1)                        # (768, 12)
    b = jnp.concatenate([ba, bgt], axis=1).astype(jnp.float32)    # (1, 12)

    if input_dtype is not None:
        # halve HBM bytes on this bandwidth-bound op; matmul accumulates in f32,
        # softmax / gumbel / argmax math stays f32.
        image = image.astype(input_dtype)
        text = text.astype(input_dtype)
        w = w.astype(input_dtype)
    u = u.astype(jnp.float32)
    itemsize = jnp.dtype(image.dtype).itemsize

    # batch tile: biggest tile that (a) keeps >=2 grid steps when possible
    # (v7x megacore sharding), (b) is a multiple of 8 (sublane rule), (c) <= block_b.
    TB = min(_round_up(block_b, 8),
             max(128, _round_up(pl.cdiv(B, 2), 8)),
             _round_up(B, 8))
    grid = (pl.cdiv(B, TB),)

    # explicit scoped-VMEM budget: double-buffered tiles + resident weight, 2x headroom
    tile_bytes = (2 * 2 * TB * D * itemsize        # image + text tiles, 2 buffers each
                  + 2 * TB * 128 * 4               # u tile (lane-padded), 2 buffers
                  + 2 * TB * 128 * 4               # fused output tile, 2 buffers
                  + 2 * D * 128 * itemsize         # fused weight (lane-padded)
                  + 2 * 8 * 128 * 4)               # bias
    vmem_limit = int(min(max(2 * tile_bytes, 16 * 1024 * 1024), 48 * 1024 * 1024))

    cost = pl.CostEstimate(
        flops=2 * 2 * B * D * (2 * N_CLS),
        transcendentals=5 * B * N_CLS,
        bytes_accessed=(2 * B * D * itemsize            # image + text reads
                        + B * N_CLS * 4                 # uniform samples
                        + D * (2 * N_CLS) * itemsize    # fused weight
                        + B * (2 * N_CLS) * 4),         # fused output
    )

    out = pl.pallas_call(
        latent_bert_kernel,
        out_shape=jax.ShapeDtypeStruct((B, 2 * N_CLS), jnp.float32),
        grid=grid,
        in_specs=[
            pl.BlockSpec((TB, D), lambda i: (i, 0)),           # image tile
            pl.BlockSpec((TB, D), lambda i: (i, 0)),           # text tile
            pl.BlockSpec((D, 2 * N_CLS), lambda i: (0, 0)),    # fused weight (resident)
            pl.BlockSpec((1, 2 * N_CLS), lambda i: (0, 0)),    # fused bias   (resident)
            pl.BlockSpec((TB, N_CLS), lambda i: (i, 0)),       # uniform samples
        ],
        out_specs=pl.BlockSpec((TB, 2 * N_CLS), lambda i: (i, 0)),
        compiler_params=pltpu.CompilerParams(
            dimension_semantics=("parallel",),
            vmem_limit_bytes=vmem_limit),
        cost_estimate=cost,
    )(image, text, w, b, u)

    return out[:, :N_CLS], out[:, N_CLS:]


if __name__ == "__main__":
    key = jax.random.PRNGKey(0)
    k_img, k_txt, k_wa, k_ba, k_wgt, k_bgt, k_u = jax.random.split(key, 7)

    B = 8
    image = jax.random.normal(k_img, (B, IN_DIM), dtype=jnp.float32)
    text = jax.random.normal(k_txt, (B, IN_DIM), dtype=jnp.float32)

    # synthetic parameters (shapes from SingleClassifier_T(768, 6, 0.1))
    wa = 0.02 * jax.random.normal(k_wa, (IN_DIM, N_CLS), dtype=jnp.float32)
    ba = 0.02 * jax.random.normal(k_ba, (1, N_CLS), dtype=jnp.float32)
    wgt = 0.02 * jax.random.normal(k_wgt, (IN_DIM, N_CLS), dtype=jnp.float32)
    bgt = 0.02 * jax.random.normal(k_bgt, (1, N_CLS), dtype=jnp.float32)

    # uniform samples for the gumbel noise (matches logits.data.new(...).uniform_())
    u = jax.random.uniform(k_u, (B, N_CLS), dtype=jnp.float32)
    g = -jnp.log(-jnp.log(u + EPS) + EPS)

    # pure-JAX reference of the PyTorch forward (f32)
    ref_img = jax.nn.softmax(image @ wa + ba, axis=1)
    p_ref = jax.nn.softmax(text @ wgt + bgt, axis=1)
    y_ref = jax.nn.softmax((p_ref + g) / TEMP, axis=1)
    ref_idx = jnp.argmax(y_ref, axis=1)

    # ---- exact f32 path ----
    di32, dt32 = latent_bert_t(image, text, wa, ba, wgt, bgt, u, input_dtype=None)
    jax.block_until_ready((di32, dt32))
    assert di32.shape == (B, N_CLS) and dt32.shape == (B, N_CLS)
    assert jnp.allclose(di32, ref_img, atol=1e-5)
    assert jnp.allclose(jnp.sum(dt32, axis=1), 1.0)
    assert jnp.all((dt32 == 0.0) | (dt32 == 1.0))
    assert jnp.array_equal(jnp.argmax(dt32, axis=1), ref_idx)

    # ---- default bf16 path (f32 accumulation; input-rounding error only) ----
    di16, dt16 = latent_bert_t(image, text, wa, ba, wgt, bgt, u)
    jax.block_until_ready((di16, dt16))
    # bf16 reference for the text-branch argmax (same cast, f32 accumulate)
    w_full16 = jnp.concatenate([wa, wgt], axis=1).astype(jnp.bfloat16)
    b_full = jnp.concatenate([ba, bgt], axis=1)
    logits16 = jnp.dot(text.astype(jnp.bfloat16), w_full16,
                       preferred_element_type=jnp.float32) + b_full
    p16 = jax.nn.softmax(logits16[:, N_CLS:], axis=1)
    ref_idx16 = jnp.argmax(p16 + g, axis=1)

    assert di16.shape == (B, N_CLS) and dt16.shape == (B, N_CLS)
    assert jnp.allclose(di16, ref_img, atol=3e-2)
    assert jnp.allclose(jnp.sum(di16, axis=1), 1.0, atol=1e-3)
    assert jnp.allclose(jnp.sum(dt16, axis=1), 1.0)
    assert jnp.all((dt16 == 0.0) | (dt16 == 1.0))
    assert jnp.array_equal(jnp.argmax(dt16, axis=1), ref_idx16)

    # ---- gridded + partial-last-block path (B=20, TB=8 -> grid=3, last block 4 rows)
    B2 = 20
    img2 = jax.random.normal(k_img, (B2, IN_DIM), dtype=jnp.float32)
    txt2 = jax.random.normal(k_txt, (B2, IN_DIM), dtype=jnp.float32)
    u2 = jax.random.uniform(k_u, (B2, N_CLS), dtype=jnp.float32)
    di2, dt2 = latent_bert_t(img2, txt2, wa, ba, wgt, bgt, u2,
                             block_b=8, input_dtype=None)
    jax.block_until_ready((di2, dt2))
    ref_img2 = jax.nn.softmax(img2 @ wa + ba, axis=1)
    assert di2.shape == (B2, N_CLS) and dt2.shape == (B2, N_CLS)
    assert jnp.allclose(di2, ref_img2, atol=1e-5)
    assert jnp.allclose(jnp.sum(dt2, axis=1), 1.0)
    assert jnp.all((dt2 == 0.0) | (dt2 == 1.0))

    print("KERNEL_OK")
</pallas_src>

<mosaic_0001>
module attributes {stable_mosaic.version = 11 : i64} {
  func.func @latent_bert_kernel(%arg0: i32, %arg1: memref<8x768xf32, #tpu.memory_space<vmem>>, %arg2: memref<8x768xf32, #tpu.memory_space<vmem>>, %arg3: memref<768x12xf32, #tpu.memory_space<vmem>>, %arg4: memref<1x12xf32, #tpu.memory_space<vmem>>, %arg5: memref<8x6xf32, #tpu.memory_space<vmem>>, %arg6: memref<8x12xf32, #tpu.memory_space<vmem>>) attributes {dimension_semantics = [#tpu.dimension_semantics<parallel>], iteration_bounds = array<i64: 1>, scalar_prefetch = 0 : i64, scratch_operands = 0 : i64, tpu.core_type = #tpu.core_type<tc>, window_params = [{transform_indices = @transform_0, window_bounds = array<i64: 8, 768>}, {transform_indices = @transform_1, window_bounds = array<i64: 8, 768>}, {pipeline_mode = #tpu.pipeline_mode<synchronous>, transform_indices = @transform_2, window_bounds = array<i64: 768, 12>}, {pipeline_mode = #tpu.pipeline_mode<synchronous>, transform_indices = @transform_3, window_bounds = array<i64: 1, 12>}, {transform_indices = @transform_4, window_bounds = array<i64: 8, 6>}, {transform_indices = @transform_5, window_bounds = array<i64: 8, 12>}]} {
    %c0 = arith.constant 0 : index
    %c0_0 = arith.constant 0 : index
    %0 = vector.load %arg3[%c0, %c0_0] : memref<768x12xf32, #tpu.memory_space<vmem>>, vector<768x12xf32>
    %c0_1 = arith.constant 0 : index
    %c0_2 = arith.constant 0 : index
    %1 = vector.load %arg4[%c0_1, %c0_2] : memref<1x12xf32, #tpu.memory_space<vmem>>, vector<1x12xf32>
    %c0_3 = arith.constant 0 : index
    %c0_4 = arith.constant 0 : index
    %2 = vector.load %arg1[%c0_3, %c0_4] : memref<8x768xf32, #tpu.memory_space<vmem>>, vector<8x768xf32>
    %cst = arith.constant dense<0.000000e+00> : vector<8x12xf32>
    %3 = tpu.matmul %2, %0, %cst {dimension_numbers = #tpu.dot_dimension_numbers<[1], [0], [0], [1], [0, 0, 1, 1], [], []>} : vector<8x768xf32>, vector<768x12xf32>, vector<8x12xf32> -> vector<8x12xf32>
    %4 = vector.broadcast %1 : vector<1x12xf32> to vector<8x12xf32>
    %5 = arith.addf %3, %4 : vector<8x12xf32>
    %c0_5 = arith.constant 0 : index
    %c0_6 = arith.constant 0 : index
    %6 = vector.load %arg2[%c0_5, %c0_6] : memref<8x768xf32, #tpu.memory_space<vmem>>, vector<8x768xf32>
    %cst_7 = arith.constant dense<0.000000e+00> : vector<8x12xf32>
    %7 = tpu.matmul %6, %0, %cst_7 {dimension_numbers = #tpu.dot_dimension_numbers<[1], [0], [0], [1], [0, 0, 1, 1], [], []>} : vector<8x768xf32>, vector<768x12xf32>, vector<8x12xf32> -> vector<8x12xf32>
    %8 = vector.broadcast %1 : vector<1x12xf32> to vector<8x12xf32>
    %9 = arith.addf %7, %8 : vector<8x12xf32>
    %10 = vector.extract_strided_slice %5 {offsets = [0, 0], sizes = [8, 6], strides = [1, 1]} : vector<8x12xf32> to vector<8x6xf32>
    %11 = vector.extract_strided_slice %9 {offsets = [0, 6], sizes = [8, 6], strides = [1, 1]} : vector<8x12xf32> to vector<8x6xf32>
    %cst_8 = arith.constant dense<0xFF800000> : vector<8xf32>
    %12 = vector.multi_reduction <maximumf>, %10, %cst_8 [1] : vector<8x6xf32> to vector<8xf32>
    %13 = vector.shape_cast %12 : vector<8xf32> to vector<8x1xf32>
    %14 = vector.broadcast %13 : vector<8x1xf32> to vector<8x6xf32>
    %15 = arith.subf %10, %14 : vector<8x6xf32>
    %16 = math.exp %15 : vector<8x6xf32>
    %cst_9 = arith.constant dense<0.000000e+00> : vector<8xf32>
    %17 = vector.multi_reduction <add>, %16, %cst_9 [1] : vector<8x6xf32> to vector<8xf32>
    %18 = vector.shape_cast %17 : vector<8xf32> to vector<8x1xf32>
    %19 = tpu.reciprocal %18 : vector<8x1xf32> -> vector<8x1xf32>
    %20 = vector.broadcast %19 : vector<8x1xf32> to vector<8x6xf32>
    %21 = arith.mulf %16, %20 : vector<8x6xf32>
    %cst_10 = arith.constant dense<0xFF800000> : vector<8xf32>
    %22 = vector.multi_reduction <maximumf>, %11, %cst_10 [1] : vector<8x6xf32> to vector<8xf32>
    %23 = vector.shape_cast %22 : vector<8xf32> to vector<8x1xf32>
    %24 = vector.broadcast %23 : vector<8x1xf32> to vector<8x6xf32>
    %25 = arith.subf %11, %24 : vector<8x6xf32>
    %26 = math.exp %25 : vector<8x6xf32>
    %cst_11 = arith.constant dense<0.000000e+00> : vector<8xf32>
    %27 = vector.multi_reduction <add>, %26, %cst_11 [1] : vector<8x6xf32> to vector<8xf32>
    %28 = vector.shape_cast %27 : vector<8xf32> to vector<8x1xf32>
    %29 = tpu.reciprocal %28 {approx = true} : vector<8x1xf32> -> vector<8x1xf32>
    %30 = vector.broadcast %29 : vector<8x1xf32> to vector<8x6xf32>
    %31 = arith.mulf %26, %30 : vector<8x6xf32>
    %c0_12 = arith.constant 0 : index
    %c0_13 = arith.constant 0 : index
    %32 = vector.load %arg5[%c0_12, %c0_13] : memref<8x6xf32, #tpu.memory_space<vmem>>, vector<8x6xf32>
    %cst_14 = arith.constant 9.99999968E-21 : f32
    %33 = vector.broadcast %cst_14 : f32 to vector<8x6xf32>
    %34 = arith.addf %32, %33 : vector<8x6xf32>
    %35 = math.log %34 : vector<8x6xf32>
    %cst_15 = arith.constant 0.000000e+00 : f32
    %36 = vector.broadcast %cst_15 : f32 to vector<8x6xf32>
    %37 = arith.subf %36, %35 : vector<8x6xf32>
    %cst_16 = arith.constant 9.99999968E-21 : f32
    %38 = vector.broadcast %cst_16 : f32 to vector<8x6xf32>
    %39 = arith.addf %37, %38 : vector<8x6xf32>
    %40 = math.log %39 : vector<8x6xf32>
    %cst_17 = arith.constant 0.000000e+00 : f32
    %41 = vector.broadcast %cst_17 : f32 to vector<8x6xf32>
    %42 = arith.subf %41, %40 : vector<8x6xf32>
    %43 = arith.addf %31, %42 : vector<8x6xf32>
    %44 = tpu.iota {dimensions = array<i32: 1>} : vector<8x6xi32>
    %cst_18 = arith.constant dense<0xFF800000> : vector<8xf32>
    %45 = vector.multi_reduction <maximumf>, %43, %cst_18 [1] : vector<8x6xf32> to vector<8xf32>
    %46 = vector.shape_cast %45 : vector<8xf32> to vector<8x1xf32>
    %47 = vector.broadcast %46 : vector<8x1xf32> to vector<8x6xf32>
    %48 = arith.cmpf oge, %43, %47 : vector<8x6xf32>
    %c6_i32 = arith.constant 6 : i32
    %49 = vector.broadcast %c6_i32 : i32 to vector<8x6xi32>
    %50 = arith.select %48, %44, %49 : vector<8x6xi1>, vector<8x6xi32>
    %cst_19 = arith.constant dense<2147483647> : vector<8xi32>
    %51 = vector.multi_reduction <minsi>, %50, %cst_19 [1] : vector<8x6xi32> to vector<8xi32>
    %52 = vector.shape_cast %51 : vector<8xi32> to vector<8x1xi32>
    %53 = vector.broadcast %52 : vector<8x1xi32> to vector<8x6xi32>
    %54 = arith.cmpi eq, %44, %53 : vector<8x6xi32>
    %55 = arith.extui %54 : vector<8x6xi1> to vector<8x6xi32>
    %56 = arith.sitofp %55 : vector<8x6xi32> to vector<8x6xf32>
    %c0_20 = arith.constant 0 : index
    %c0_21 = arith.constant 0 : index
    %57 = vector.load %arg6[%c0_20, %c0_21] : memref<8x12xf32, #tpu.memory_space<vmem>>, vector<8x6xf32>
    tpu.vector_store %arg6[%c0_20, %c0_21], %21 {strides = array<i32>} : memref<8x12xf32, #tpu.memory_space<vmem>>, vector<8x6xf32>,
    %c0_22 = arith.constant 0 : index
    %c6 = arith.constant 6 : index
    %58 = vector.load %arg6[%c0_22, %c6] : memref<8x12xf32, #tpu.memory_space<vmem>>, vector<8x6xf32>
    tpu.vector_store %arg6[%c0_22, %c6], %56 {strides = array<i32>} : memref<8x12xf32, #tpu.memory_space<vmem>>, vector<8x6xf32>,
    return
  }
  func.func @transform_0(%arg0: i32) -> (i32, i32) {
    %c0_i32 = arith.constant 0 : i32
    %c0_i32_0 = arith.constant 0 : i32
    return %arg0, %c0_i32 : i32, i32
  }
  func.func @transform_1(%arg0: i32) -> (i32, i32) {
    %c0_i32 = arith.constant 0 : i32
    %c0_i32_0 = arith.constant 0 : i32
    return %arg0, %c0_i32 : i32, i32
  }
  func.func @transform_2(%arg0: i32) -> (i32, i32) {
    %c0_i32 = arith.constant 0 : i32
    %c0_i32_0 = arith.constant 0 : i32
    %c0_i32_1 = arith.constant 0 : i32
    return %c0_i32, %c0_i32_0 : i32, i32
  }
  func.func @transform_3(%arg0: i32) -> (i32, i32) {
    %c0_i32 = arith.constant 0 : i32
    %c0_i32_0 = arith.constant 0 : i32
    %c0_i32_1 = arith.constant 0 : i32
    return %c0_i32, %c0_i32_0 : i32, i32
  }
  func.func @transform_4(%arg0: i32) -> (i32, i32) {
    %c0_i32 = arith.constant 0 : i32
    %c0_i32_0 = arith.constant 0 : i32
    return %arg0, %c0_i32 : i32, i32
  }
  func.func @transform_5(%arg0: i32) -> (i32, i32) {
    %c0_i32 = arith.constant 0 : i32
    %c0_i32_0 = arith.constant 0 : i32
    return %arg0, %c0_i32 : i32, i32
  }
}

</mosaic_0001>

<bundles_post_ra>
// kernel: tpu_custom_call.1
= control target key start
LH: loop header
LB: loop body
LE: loop exit
PB: predicated region body
PF: predicated region fallthrough
CT: control target
= control target key end

     0   :  { %s1657_s0 = inlined_call_operand.vmem [shape: f32[8,768], index: 0, kind: input, shape index: {}]   ;;  %s1658_s1 = inlined_call_operand.vmem [shape: f32[8,768], index: 1, kind: input, shape index: {}]   ;;  %s1659_s2 = inlined_call_operand.vmem [shape: f32[768,12], index: 2, kind: input, shape index: {}]   ;;  %s1660_s3 = inlined_call_operand.vmem [shape: f32[1,12], index: 3, kind: input, shape index: {}]   ;;  %s1661_s4 = inlined_call_operand.vmem [shape: f32[8,6], index: 4, kind: input, shape index: {}]   ;;  %s1662_s5 = inlined_call_operand.hbm [shape: f32[8,12], index: 5, kind: output, shape index: {}]  }
   0x1   :  { %v932_v0 = vld [vmem:[%s1659_s2 + $0xf8] sm:$0xff]  ;;  %v954_v4 = vld [vmem:[%s1659_s2 + $0xf0] sm:$0xff]  ;;  %v976_v8 = vld [vmem:[%s1659_s2 + $0xe8] sm:$0xff] }
   0x2   :  { %v937_v1 = vld [vmem:[%s1659_s2 + $0x1f8] sm:$0xff]  ;;  %647 = vmatprep.subr.mxu0 %v932_v0  ;;  %v959_v5 = vld [vmem:[%s1659_s2 + $0x1f0] sm:$0xff]  ;;  %v983_v9 = vld [vmem:[%s1659_s2 + $0x1e8] sm:$0xff] }
   0x3   :  { %v942_v2 = vld [vmem:[%s1659_s2 + $0x78] sm:$0xff]  ;;  %682 = vmatprep.subr.mxu1 %v937_v1  ;;  %v966_v6 = vld [vmem:[%s1659_s2 + $0x70] sm:$0xff]  ;;  %v988_v10 = vld [vmem:[%s1659_s2 + $0x68] sm:$0xff] }
   0x4   :  { %v949_v3 = vld [vmem:[%s1659_s2 + $0x178] sm:$0xff]  ;;  %648 = vmatpush3.msra.mxu0 %v942_v2  ;;  %v971_v7 = vld [vmem:[%s1659_s2 + $0x170] sm:$0xff]  ;;  %v993_v11 = vld [vmem:[%s1659_s2 + $0x168] sm:$0xff] }
   0x5   :  { %683 = vmatpush3.msra.mxu1 %v949_v3  ;;  %649 = vmatprep.subr.mxu0 %v954_v4  ;;  %v1000_v12 = vld [vmem:[%s1659_s2 + $0xe0] sm:$0xff]  ;;  %v1024_v16 = vld [vmem:[%s1659_s2 + $0xd8] sm:$0xff]  ;;  %v1048_v20 = vld [vmem:[%s1659_s2 + $0xd0] sm:$0xff] }
   0x6   :  { %684 = vmatprep.subr.mxu1 %v959_v5  ;;  %650 = vmatpush3.msra.mxu0 %v966_v6  ;;  %v1005_v13 = vld [vmem:[%s1659_s2 + $0x1e0] sm:$0xff]  ;;  %v1029_v17 = vld [vmem:[%s1659_s2 + $0x1d8] sm:$0xff]  ;;  %v1053_v21 = vld [vmem:[%s1659_s2 + $0x1d0] sm:$0xff] }
   0x7   :  { %685 = vmatpush3.msra.mxu1 %v971_v7  ;;  %651 = vmatprep.subr.mxu0 %v976_v8  ;;  %v1012_v14 = vld [vmem:[%s1659_s2 + $0x60] sm:$0xff]  ;;  %v1036_v18 = vld [vmem:[%s1659_s2 + $0x58] sm:$0xff]  ;;  %v1060_v22 = vld [vmem:[%s1659_s2 + $0x50] sm:$0xff] }
   0x8   :  { %686 = vmatprep.subr.mxu1 %v983_v9  ;;  %v1017_v15 = vld [vmem:[%s1659_s2 + $0x160] sm:$0xff]  ;;  %652 = vmatpush3.msra.mxu0 %v988_v10  ;;  %v1041_v19 = vld [vmem:[%s1659_s2 + $0x158] sm:$0xff]  ;;  %v1065_v23 = vld [vmem:[%s1659_s2 + $0x150] sm:$0xff] }
   0x9   :  { %687 = vmatpush3.msra.mxu1 %v993_v11  ;;  %653 = vmatprep.subr.mxu0 %v1000_v12  ;;  %v1072_v24 = vld [vmem:[%s1659_s2 + $0xc8] sm:$0xff]  ;;  %v1096_v28 = vld [vmem:[%s1659_s2 + $0xc0] sm:$0xff]  ;;  %v1120_v32 = vld [vmem:[%s1659_s2 + $0xb8] sm:$0xff] }
   0xa   :  { %688 = vmatprep.subr.mxu1 %v1005_v13  ;;  %654 = vmatpush3.msra.mxu0 %v1012_v14  ;;  %v1077_v25 = vld [vmem:[%s1659_s2 + $0x1c8] sm:$0xff]  ;;  %v1101_v29 = vld [vmem:[%s1659_s2 + $0x1c0] sm:$0xff]  ;;  %v1125_v33 = vld [vmem:[%s1659_s2 + $0x1b8] sm:$0xff] }
   0xb   :  { %689 = vmatpush3.msra.mxu1 %v1017_v15  ;;  %655 = vmatprep.subr.mxu0 %v1024_v16  ;;  %v1084_v26 = vld [vmem:[%s1659_s2 + $0x48] sm:$0xff]  ;;  %v1108_v30 = vld [vmem:[%s1659_s2 + $0x40] sm:$0xff]  ;;  %v1132_v34 = vld [vmem:[%s1659_s2 + $0x38] sm:$0xff] }
   0xc   :  { %690 = vmatprep.subr.mxu1 %v1029_v17  ;;  %656 = vmatpush3.msra.mxu0 %v1036_v18  ;;  %v1089_v27 = vld [vmem:[%s1659_s2 + $0x148] sm:$0xff]  ;;  %v1113_v31 = vld [vmem:[%s1659_s2 + $0x140] sm:$0xff]  ;;  %v1137_v35 = vld [vmem:[%s1659_s2 + $0x138] sm:$0xff] }
   0xd   :  { %691 = vmatpush3.msra.mxu1 %v1041_v19  ;;  %657 = vmatprep.subr.mxu0 %v1048_v20  ;;  %v1144_v36 = vld [vmem:[%s1659_s2 + $0xb0] sm:$0xff]  ;;  %v1168_v40 = vld [vmem:[%s1659_s2 + $0xa8] sm:$0xff]  ;;  %v1192_v44 = vld [vmem:[%s1659_s2 + $0xa0] sm:$0xff] }
   0xe   :  { %692 = vmatprep.subr.mxu1 %v1053_v21  ;;  %658 = vmatpush3.msra.mxu0 %v1060_v22  ;;  %v1149_v37 = vld [vmem:[%s1659_s2 + $0x1b0] sm:$0xff]  ;;  %v1173_v41 = vld [vmem:[%s1659_s2 + $0x1a8] sm:$0xff]  ;;  %v1197_v45 = vld [vmem:[%s1659_s2 + $0x1a0] sm:$0xff] }
   0xf   :  { %693 = vmatpush3.msra.mxu1 %v1065_v23  ;;  %659 = vmatprep.subr.mxu0 %v1072_v24  ;;  %v1156_v38 = vld [vmem:[%s1659_s2 + $0x30] sm:$0xff]  ;;  %v1180_v42 = vld [vmem:[%s1659_s2 + $0x28] sm:$0xff]  ;;  %v1204_v46 = vld [vmem:[%s1659_s2 + $0x20] sm:$0xff] }
  0x10   :  { %694 = vmatprep.subr.mxu1 %v1077_v25  ;;  %660 = vmatpush3.msra.mxu0 %v1084_v26  ;;  %v1161_v39 = vld [vmem:[%s1659_s2 + $0x130] sm:$0xff]  ;;  %v1185_v43 = vld [vmem:[%s1659_s2 + $0x128] sm:$0xff]  ;;  %v1209_v47 = vld [vmem:[%s1659_s2 + $0x120] sm:$0xff] }
  0x11   :  { %695 = vmatpush3.msra.mxu1 %v1089_v27  ;;  %661 = vmatprep.subr.mxu0 %v1096_v28  ;;  %v1216_v48 = vld [vmem:[%s1659_s2 + $0x98] sm:$0xff]  ;;  %v1240_v52 = vld [vmem:[%s1659_s2 + $0x90] sm:$0xff]  ;;  %v1264_v56 = vld [vmem:[%s1659_s2 + $0x88] sm:$0xff] }
  0x12   :  { %696 = vmatprep.subr.mxu1 %v1101_v29  ;;  %662 = vmatpush3.msra.mxu0 %v1108_v30  ;;  %v1221_v49 = vld [vmem:[%s1659_s2 + $0x198] sm:$0xff]  ;;  %v1245_v53 = vld [vmem:[%s1659_s2 + $0x190] sm:$0xff]  ;;  %v1269_v57 = vld [vmem:[%s1659_s2 + $0x188] sm:$0xff] }
  0x13   :  { %697 = vmatpush3.msra.mxu1 %v1113_v31  ;;  %663 = vmatprep.subr.mxu0 %v1120_v32  ;;  %1670 = vst [vmem:[#allocation5_spill] sm:$0xff] %v1221_v49  ;;  %v1228_v50 = vld [vmem:[%s1659_s2 + $0x18] sm:$0xff]  ;;  %1672 = vst [vmem:[#allocation7_spill] sm:$0xff] %v1245_v53  ;;  %v1252_v54 = vld [vmem:[%s1659_s2 + $0x10] sm:$0xff] }
  0x14   :  { %698 = vmatprep.subr.mxu1 %v1125_v33  ;;  %664 = vmatpush3.msra.mxu0 %v1132_v34  ;;  %v1233_v51 = vld [vmem:[%s1659_s2 + $0x118] sm:$0xff]  ;;  %v1257_v55 = vld [vmem:[%s1659_s2 + $0x110] sm:$0xff]  ;;  %1674 = vst [vmem:[#allocation9_spill] sm:$0xff] %v1269_v57  ;;  %v1276_v58 = vld [vmem:[%s1659_s2 + $0x8] sm:$0xff] }
  0x15   :  { %699 = vmatpush3.msra.mxu1 %v1137_v35  ;;  %665 = vmatprep.subr.mxu0 %v1144_v36  ;;  %1671 = vst [vmem:[#allocation6_spill] sm:$0xff] %v1233_v51  ;;  %1673 = vst [vmem:[#allocation8_spill] sm:$0xff] %v1257_v55  ;;  %v1281_v59 = vld [vmem:[%s1659_s2 + $0x108] sm:$0xff]  ;;  %v1288_v60 = vld [vmem:[%s1659_s2 + $0x80] sm:$0xff] }
  0x16   :  { %700 = vmatprep.subr.mxu1 %v1149_v37  ;;  %666 = vmatpush3.msra.mxu0 %v1156_v38  ;;  %1675 = vst [vmem:[#allocation10_spill] sm:$0xff] %v1281_v59  ;;  %v1293_v61 = vld [vmem:[%s1659_s2 + $0x180] sm:$0xff]  ;;  %v119_v63 = vld [vmem:[%s1657_s0 + $0x8] sm:$0xff] }
  0x17   :  { %701 = vmatpush3.msra.mxu1 %v1161_v39  ;;  %667 = vmatprep.subr.mxu0 %v1168_v40  ;;  %1676 = vst [vmem:[#allocation11_spill] sm:$0xff] %v1293_v61  ;;  %v1300_v62 = vld [vmem:[%s1659_s2] sm:$0xff] }
  0x18   :  { %702 = vmatprep.subr.mxu1 %v1173_v41  ;;  %668 = vmatpush3.msra.mxu0 %v1180_v42 }
  0x19   :  { %703 = vmatpush3.msra.mxu1 %v1185_v43  ;;  %669 = vmatprep.subr.mxu0 %v1192_v44 }
  0x1a   :  { %704 = vmatprep.subr.mxu1 %v1197_v45  ;;  %670 = vmatpush3.msra.mxu0 %v1204_v46 }
  0x1b   :  { %705 = vmatpush3.msra.mxu1 %v1209_v47  ;;  %671 = vmatprep.subr.mxu0 %v1216_v48 }
  0x1c   :  { %706 = vmatprep.subr.mxu1 %v1221_v49  ;;  %672 = vmatpush3.msra.mxu0 %v1228_v50  ;;  %v1339_v49 = vld [vmem:[%s1659_s2 + $0x2f0] sm:$0xff] }
  0x1d   :  { %707 = vmatpush3.msra.mxu1 %v1233_v51  ;;  %673 = vmatprep.subr.mxu0 %v1240_v52  ;;  %v120_v51 = vld [vmem:[%s1657_s0 + $0x10] sm:$0xff] }
  0x1e   :  { %708 = vmatprep.subr.mxu1 %v1245_v53  ;;  %674 = vmatpush3.msra.mxu0 %v1252_v54  ;;  %v121_v53 = vld [vmem:[%s1657_s0 + $0x18] sm:$0xff] }
  0x1f   :  { %709 = vmatpush3.msra.mxu1 %v1257_v55  ;;  %675 = vmatprep.subr.mxu0 %v1264_v56  ;;  %v1310_v55 = vld [vmem:[%s1659_s2 + $0x100] sm:$0xff] }
  0x20   :  { %710 = vmatprep.subr.mxu1 %v1269_v57  ;;  %676 = vmatpush3.msra.mxu0 %v1276_v58  ;;  %v118_v57 = vld [vmem:[%s1657_s0] sm:$0xff] }
  0x21   :  { %711 = vmatpush3.msra.mxu1 %v1281_v59  ;;  %677 = vmatprep.subr.mxu0 %v1288_v60  ;;  %v1323_v59 = vld [vmem:[%s1659_s2 + $0x2f8] sm:$0xff] }
  0x22   :  { %712 = vmatprep.subr.mxu1 %v1293_v61  ;;  %678 = vmatpush3.msra.mxu0 %v1300_v62  ;;  %v1333_v61 = vld [vmem:[%s1659_s2 + $0x278] sm:$0xff] }
  0x23   :  { %194 = vmatprep.mubr.f32.mxu0 %v119_v63  ;;  %713 = vmatpush3.msra.mxu1 %v1310_v55 }
  0x24   :  { %195 = vmatmul.mubr.f32.vlgmr.msra.gmra.mxu0 %v118_v57  ;;  %264 = vmatprep.mubr.f32.mxu1 %v121_v53  ;;  %v1345_v57 = vld [vmem:[%s1659_s2 + $0x270] sm:$0xff]  ;;  %v1352_v53 = vld [vmem:[%s1659_s2 + $0x2e8] sm:$0xff] }
  0x25   :  { %717 = vmatprep.subr.mxu0 %v1323_v59  ;;  %752 = vmatprep.subr.mxu1 %v932_v0 }
  0x26   :  { %265 = vmatmul.mubr.f32.vlgmr.msra.gmra.mxu1 %v120_v51  ;;  %718 = vmatpush3.msra.mxu0 %v1333_v61 }
  0x27   :  { %753 = vmatpush3.msra.mxu1 %v942_v2 }
  0x28   :  { %10 = vsyncpa [#allocation3], 0  ;;  %719 = vmatprep.subr.mxu0 %v1339_v49  ;;  %754 = vmatprep.subr.mxu1 %v954_v4  ;;  %v1359_v0 = vld [vmem:[%s1659_s2 + $0x268] sm:$0xff]  ;;  %v1366_v2 = vld [vmem:[%s1659_s2 + $0x2e0] sm:$0xff]  ;;  %vm568_vm0 = vcmask 97328   ;;  %vm556_vm1 = vcmask 48128  }
  0x29   :  { %720 = vmatpush3.msra.mxu0 %v1345_v57  ;;  %755 = vmatpush3.msra.mxu1 %v966_v6  ;;  %v1373_v4 = vld [vmem:[%s1659_s2 + $0x260] sm:$0xff]  ;;  %v1380_v6 = vld [vmem:[%s1659_s2 + $0x2d8] sm:$0xff]  ;;  %s896_s10 = smov 6  }
  0x2a   :  { %721 = vmatprep.subr.mxu0 %v1352_v53  ;;  %756 = vmatprep.subr.mxu1 %v976_v8  ;;  %v1387_v8 = vld [vmem:[%s1659_s2 + $0x258] sm:$0xff]  ;;  %v1541_v51 = vld [vmem:[%s1659_s2 + $0x200] sm:$0xff] }
  0x2b   :  { %722 = vmatpush3.msra.mxu0 %v1359_v0  ;;  %757 = vmatpush3.msra.mxu1 %v988_v10  ;;  %v1394_v10 = vld [vmem:[%s1659_s2 + $0x2d0] sm:$0xff]  ;;  %v340_v63 = vld [vmem:[%s1658_s1] sm:$0xff] }
  0x2c   :  { %723 = vmatprep.subr.mxu0 %v1366_v2  ;;  %758 = vmatprep.subr.mxu1 %v1000_v12  ;;  %v1401_v12 = vld [vmem:[%s1659_s2 + $0x250] sm:$0xff] }
  0x2d   :  { %724 = vmatpush3.msra.mxu0 %v1373_v4  ;;  %759 = vmatpush3.msra.mxu1 %v1012_v14  ;;  %v1408_v14 = vld [vmem:[%s1659_s2 + $0x2c8] sm:$0xff] }
  0x2e   :  { %725 = vmatprep.subr.mxu0 %v1380_v6  ;;  %760 = vmatprep.subr.mxu1 %v1024_v16  ;;  %v1415_v16 = vld [vmem:[%s1659_s2 + $0x248] sm:$0xff] }
  0x2f   :  { %726 = vmatpush3.msra.mxu0 %v1387_v8  ;;  %761 = vmatpush3.msra.mxu1 %v1036_v18  ;;  %v1422_v18 = vld [vmem:[%s1659_s2 + $0x2c0] sm:$0xff] }
  0x30   :  { %727 = vmatprep.subr.mxu0 %v1394_v10  ;;  %762 = vmatprep.subr.mxu1 %v1048_v20  ;;  %v1429_v20 = vld [vmem:[%s1659_s2 + $0x240] sm:$0xff] }
  0x31   :  { %728 = vmatpush3.msra.mxu0 %v1401_v12  ;;  %763 = vmatpush3.msra.mxu1 %v1060_v22  ;;  %v1436_v22 = vld [vmem:[%s1659_s2 + $0x2b8] sm:$0xff] }
  0x32   :  { %729 = vmatprep.subr.mxu0 %v1408_v14  ;;  %764 = vmatprep.subr.mxu1 %v1072_v24  ;;  %v1443_v24 = vld [vmem:[%s1659_s2 + $0x238] sm:$0xff] }
  0x33   :  { %730 = vmatpush3.msra.mxu0 %v1415_v16  ;;  %765 = vmatpush3.msra.mxu1 %v1084_v26  ;;  %v1450_v26 = vld [vmem:[%s1659_s2 + $0x2b0] sm:$0xff] }
  0x34   :  { %731 = vmatprep.subr.mxu0 %v1422_v18  ;;  %766 = vmatprep.subr.mxu1 %v1096_v28  ;;  %v1457_v28 = vld [vmem:[%s1659_s2 + $0x230] sm:$0xff] }
  0x35   :  { %732 = vmatpush3.msra.mxu0 %v1429_v20  ;;  %767 = vmatpush3.msra.mxu1 %v1108_v30  ;;  %v1464_v30 = vld [vmem:[%s1659_s2 + $0x2a8] sm:$0xff] }
  0x36   :  { %733 = vmatprep.subr.mxu0 %v1436_v22  ;;  %768 = vmatprep.subr.mxu1 %v1120_v32  ;;  %v1471_v32 = vld [vmem:[%s1659_s2 + $0x228] sm:$0xff] }
  0x37   :  { %734 = vmatpush3.msra.mxu0 %v1443_v24  ;;  %769 = vmatpush3.msra.mxu1 %v1132_v34  ;;  %v1478_v34 = vld [vmem:[%s1659_s2 + $0x2a0] sm:$0xff] }
  0x38   :  { %735 = vmatprep.subr.mxu0 %v1450_v26  ;;  %770 = vmatprep.subr.mxu1 %v1144_v36  ;;  %v1485_v36 = vld [vmem:[%s1659_s2 + $0x220] sm:$0xff] }
  0x39   :  { %736 = vmatpush3.msra.mxu0 %v1457_v28  ;;  %771 = vmatpush3.msra.mxu1 %v1156_v38  ;;  %v1492_v38 = vld [vmem:[%s1659_s2 + $0x298] sm:$0xff] }
  0x3a   :  { %737 = vmatprep.subr.mxu0 %v1464_v30  ;;  %772 = vmatprep.subr.mxu1 %v1168_v40  ;;  %v1499_v40 = vld [vmem:[%s1659_s2 + $0x218] sm:$0xff] }
  0x3b   :  { %738 = vmatpush3.msra.mxu0 %v1471_v32  ;;  %773 = vmatpush3.msra.mxu1 %v1180_v42  ;;  %v1506_v42 = vld [vmem:[%s1659_s2 + $0x290] sm:$0xff] }
  0x3c   :  { %739 = vmatprep.subr.mxu0 %v1478_v34  ;;  %774 = vmatprep.subr.mxu1 %v1192_v44  ;;  %v1513_v44 = vld [vmem:[%s1659_s2 + $0x210] sm:$0xff] }
  0x3d   :  { %740 = vmatpush3.msra.mxu0 %v1485_v36  ;;  %775 = vmatpush3.msra.mxu1 %v1204_v46  ;;  %v1520_v46 = vld [vmem:[%s1659_s2 + $0x288] sm:$0xff] }
  0x3e   :  { %741 = vmatprep.subr.mxu0 %v1492_v38  ;;  %776 = vmatprep.subr.mxu1 %v1216_v48  ;;  %v1527_v48 = vld [vmem:[%s1659_s2 + $0x208] sm:$0xff] }
  0x3f   :  { %742 = vmatpush3.msra.mxu0 %v1499_v40  ;;  %777 = vmatpush3.msra.mxu1 %v1228_v50  ;;  %v1534_v50 = vld [vmem:[%s1659_s2 + $0x280] sm:$0xff] }
  0x40   :  { %743 = vmatprep.subr.mxu0 %v1506_v42  ;;  %778 = vmatprep.subr.mxu1 %v1240_v52  ;;  %v123_v52 = vld [vmem:[%s1657_s0 + $0x28] sm:$0xff] }
  0x41   :  { %744 = vmatpush3.msra.mxu0 %v1513_v44  ;;  %779 = vmatpush3.msra.mxu1 %v1252_v54  ;;  %v122_v54 = vld [vmem:[%s1657_s0 + $0x20] sm:$0xff] }
  0x42   :  { %745 = vmatprep.subr.mxu0 %v1520_v46  ;;  %780 = vmatprep.subr.mxu1 %v1264_v56  ;;  %v341_v56 = vld [vmem:[%s1658_s1 + $0x8] sm:$0xff] }
  0x43   :  { %746 = vmatpush3.msra.mxu0 %v1527_v48  ;;  %781 = vmatpush3.msra.mxu1 %v1276_v58 }
  0x44   :  { %747 = vmatprep.subr.mxu0 %v1534_v50  ;;  %782 = vmatprep.subr.mxu1 %v1288_v60 }
  0x45   :  { %748 = vmatpush3.msra.mxu0 %v1541_v51  ;;  %334 = vmatprep.mubr.f32.mxu0 %v123_v52 }
  0x46   :  { %783 = vmatpush3.msra.mxu1 %v1300_v62  ;;  %335 = vmatmul.mubr.f32.vlgmr.msra.gmra.mxu0 %v122_v54 }
  0x47   :  { %410 = vmatprep.mubr.f32.mxu1 %v341_v56  ;;  %787 = vmatprep.subr.mxu0 %v937_v1  ;;  %v1677_v1 = vld [vmem:[#allocation5_spill] sm:$0xff] }
  0x48   :  { %822 = vmatprep.subr.mxu1 %v1323_v59  ;;  %411 = vmatmul.mubr.f32.vlgmr.msra.gmra.mxu1 %v340_v63 }
  0x49   :  { %788 = vmatpush3.msra.mxu0 %v949_v3  ;;  %823 = vmatpush3.msra.mxu1 %v1333_v61  ;;  %v1678_v3 = vld [vmem:[#allocation6_spill] sm:$0xff] }
  0x4a   :  { %789 = vmatprep.subr.mxu0 %v959_v5  ;;  %824 = vmatprep.subr.mxu1 %v1339_v49  ;;  %v1679_v5 = vld [vmem:[#allocation7_spill] sm:$0xff] }
  0x4b   :  { %790 = vmatpush3.msra.mxu0 %v971_v7  ;;  %825 = vmatpush3.msra.mxu1 %v1345_v57  ;;  %v1680_v7 = vld [vmem:[#allocation8_spill] sm:$0xff] }
  0x4c   :  { %791 = vmatprep.subr.mxu0 %v983_v9  ;;  %826 = vmatprep.subr.mxu1 %v1352_v53  ;;  %v1681_v9 = vld [vmem:[#allocation9_spill] sm:$0xff] }
  0x4d   :  { %792 = vmatpush3.msra.mxu0 %v993_v11  ;;  %827 = vmatpush3.msra.mxu1 %v1359_v0  ;;  %v343_v11 = vld [vmem:[%s1658_s1 + $0x18] sm:$0xff] }
  0x4e   :  { %793 = vmatprep.subr.mxu0 %v1005_v13  ;;  %828 = vmatprep.subr.mxu1 %v1366_v2  ;;  %v1682_v13 = vld [vmem:[#allocation10_spill] sm:$0xff] }
  0x4f   :  { %794 = vmatpush3.msra.mxu0 %v1017_v15  ;;  %829 = vmatpush3.msra.mxu1 %v1373_v4  ;;  %v345_v15 = vld [vmem:[%s1658_s1 + $0x28] sm:$0xff] }
  0x50   :  { %795 = vmatprep.subr.mxu0 %v1029_v17  ;;  %830 = vmatprep.subr.mxu1 %v1380_v6  ;;  %v1683_v17 = vld [vmem:[#allocation11_spill] sm:$0xff] }
  0x51   :  { %796 = vmatpush3.msra.mxu0 %v1041_v19  ;;  %831 = vmatpush3.msra.mxu1 %v1387_v8  ;;  %v342_v19 = vld [vmem:[%s1658_s1 + $0x10] sm:$0xff] }
  0x52   :  { %797 = vmatprep.subr.mxu0 %v1053_v21  ;;  %832 = vmatprep.subr.mxu1 %v1394_v10  ;;  %v344_v21 = vld [vmem:[%s1658_s1 + $0x20] sm:$0xff]  ;;  %s895_s1 = smov 122  }
  0x53   :  { %798 = vmatpush3.msra.mxu0 %v1065_v23  ;;  %833 = vmatpush3.msra.mxu1 %v1401_v12 }
  0x54   :  { %799 = vmatprep.subr.mxu0 %v1077_v25  ;;  %834 = vmatprep.subr.mxu1 %v1408_v14 }
  0x55   :  { %800 = vmatpush3.msra.mxu0 %v1089_v27  ;;  %835 = vmatpush3.msra.mxu1 %v1415_v16  ;;  %v645_v27 = vld [vmem:[%s1660_s3] ss:$0 sm:$0xff] }
  0x56   :  { %801 = vmatprep.subr.mxu0 %v1101_v29  ;;  %836 = vmatprep.subr.mxu1 %v1422_v18  ;;  %v584_v16 = vld [vmem:[%s1661_s4] sm:$0xff]  ;;  %s898_s4 = smov [#allocation2]  }
  0x57   :  { %802 = vmatpush3.msra.mxu0 %v1113_v31  ;;  %837 = vmatpush3.msra.mxu1 %v1429_v20  ;;  %v585_v18 = vadd.f32 1e-20, %v584_v16  ;;  %s637_s11 = sshll.u32 %s898_s4, 4  ;;  %s638_s11 = int_to_ptr.vmem [resolvable:$true] %s637_s11 }
  0x58   :  { %803 = vmatprep.subr.mxu0 %v1125_v33  ;;  %838 = vmatprep.subr.mxu1 %v1436_v22  ;;  %s873_s12 = scalar_lea.vmem %s638_s11, 128  ;;  %p878_p1 = scmp.lt.s32.totalorder %s638_s11, %s638_s11 }
  0x59   :  { %804 = vmatpush3.msra.mxu0 %v1137_v35  ;;  %839 = vmatpush3.msra.mxu1 %v1443_v24  ;;  %p874_p0 = scmp.ne.s32.totalorder %s638_s11, %s873_s12  ;;  %p879_p2 = scmp.lt.s32.totalorder %s873_s12, %s873_s12 }
  0x5a   :  { %805 = vmatprep.subr.mxu0 %v1149_v37  ;;  %840 = vmatprep.subr.mxu1 %v1450_v26 }
  0x5b   :  { %806 = vmatpush3.msra.mxu0 %v1161_v39  ;;  %841 = vmatpush3.msra.mxu1 %v1457_v28  ;;  %p880_p3 = por %p879_p2, %p878_p1 }
  0x5c   :  { %807 = vmatprep.subr.mxu0 %v1173_v41  ;;  %842 = vmatprep.subr.mxu1 %v1464_v30 }
  0x5d   :  { %808 = vmatpush3.msra.mxu0 %v1185_v43  ;;  %843 = vmatpush3.msra.mxu1 %v1471_v32  ;;  %p881_p4 = pnand %p880_p3, %p874_p0 }
  0x5e   :  { %809 = vmatprep.subr.mxu0 %v1197_v45  ;;  %844 = vmatprep.subr.mxu1 %v1478_v34 }
  0x5f   :  { %810 = vmatpush3.msra.mxu0 %v1209_v47  ;;  %845 = vmatpush3.msra.mxu1 %v1485_v36 }
  0x60   :  { %811 = vmatprep.subr.mxu0 %v1677_v1  ;;  %846 = vmatprep.subr.mxu1 %v1492_v38  ;;  %v598_v38 = vlaneseq }
  0x61   :  { %812 = vmatpush3.msra.mxu0 %v1678_v3  ;;  %847 = vmatpush3.msra.mxu1 %v1499_v40 }
  0x62   :  { %813 = vmatprep.subr.mxu0 %v1679_v5  ;;  %848 = vmatprep.subr.mxu1 %v1506_v42  ;;  %v599_v40 = vand.u32 127, %v598_v38 }
  0x63   :  { %814 = vmatpush3.msra.mxu0 %v1680_v7  ;;  %849 = vmatpush3.msra.mxu1 %v1513_v44 }
  0x64   :  { %815 = vmatprep.subr.mxu0 %v1681_v9  ;;  %850 = vmatprep.subr.mxu1 %v1520_v46 }
  0x65   :  { %816 = vmatpush3.msra.mxu0 %v1682_v13  ;;  %851 = vmatpush3.msra.mxu1 %v1527_v48 }
  0x66   :  { %817 = vmatprep.subr.mxu0 %v1683_v17  ;;  %852 = vmatprep.subr.mxu1 %v1534_v50 }
  0x67   :  { %818 = vmatpush3.msra.mxu0 %v1310_v55  ;;  %480 = vmatprep.mubr.f32.mxu0 %v343_v11 }
  0x68   :  { %853 = vmatpush3.msra.mxu1 %v1541_v51  ;;  %550 = vmatprep.mubr.f32.mxu1 %v345_v15 }
  0x69   :  { %481 = vmatmul.mubr.f32.vlgmr.msra.gmra.mxu0 %v342_v19  ;;  %551 = vmatmul.mubr.f32.vlgmr.msra.gmra.mxu1 %v344_v21 }
  0xe4   :  { %v679_v23 = vpop.f32.mrf.mxu0 }
  0xe6   :  { %v714_v25 = vpop.f32.mrf.mxu1  ;;  %v680_v29 = vpop.f32.mrf.mxu0 }
  0xe7   :  { %v681_v31 = vadd.f32 %v680_v29, %v679_v23 }
  0xe8   :  { %v715_v33 = vpop.f32.mrf.mxu1 }
  0xe9   :  { %v197_v35 = vadd.f32 %v681_v31, %v645_v27  ;;  %v716_v37 = vadd.f32 %v715_v33, %v714_v25 }
  0xeb   :  { %v267_v39 = vadd.f32 %v716_v37, %v197_v35 }
 0x106   :  { %v749_v41 = vpop.f32.mrf.mxu0 }
 0x108   :  { %v750_v43 = vpop.f32.mrf.mxu0  ;;  %v784_v49 = vpop.f32.mrf.mxu1 }
 0x109   :  { %v751_v45 = vadd.f32 %v750_v43, %v749_v41  ;;  %v897_v41 = vmov 0.0  }
 0x10a   :  { %v785_v55 = vpop.f32.mrf.mxu1 }
 0x10b   :  { %v337_v47 = vadd.f32 %v751_v45, %v267_v39  ;;  %v786_v58 = vadd.f32 %v785_v55, %v784_v49 }
 0x10d   :  { %v413_v57 = vadd.f32 %v786_v58, %v645_v27  ;;  %v557_v52 = vsel %vm556_vm1, %v337_v47, -inf }
 0x129   :  { %v819_v59 = vpop.f32.mrf.mxu0  ;;  %v854_v60 = vpop.f32.mrf.mxu1 }
 0x12b   :  { %v820_v61 = vpop.f32.mrf.mxu0  ;;  %v855_v62 = vpop.f32.mrf.mxu1 }
 0x12c   :  { %v821_v53 = vadd.f32 %v820_v61, %v819_v59  ;;  %v856_v2 = vadd.f32 %v855_v62, %v854_v60 }
 0x12e   :  { %v483_v0 = vadd.f32 %v821_v53, %v413_v57 }
 0x130   :  { %v553_v4 = vadd.f32 %v856_v2, %v483_v0 }
 0x132   :  { %v569_v6 = vsel %vm568_vm0, %v553_v4, -inf }
 0x133   :  { %570 = vmax.xlane.f32.xlu0 %v569_v6 }
 0x1bc   :  { %v571_v8 = vpop.xlane.xlu0 %570 }
 0x1bd   :  { %v572_v10 = vsub.f32 %v553_v4, %v571_v8 }
 0x1bf   :  { %v573_v12 = vmul.f32 1.442695, %v572_v10 }
 0x1c1   :  { %861 = vpow2.f32 %v573_v12 }
 0x1c2   :  { %863 = vlog2.f32 %v585_v18 }
 0x1ce   :  { %v862_v14 = vpop.eup %861 }
 0x1cf   :  { %576 = vrot.lane.b32.xlu0 %v862_v14, %s895_s1  ;;  %v864_v20 = vpop.eup %863 }
 0x1d0   :  { %v587_v22 = vmul.f32 0.6931472, %v864_v20 }
 0x1d2   :  { %v588_v24 = vsub.f32 0.0, %v587_v22 }
 0x1d3   :  { %604 = vrot.lane.b32.xlu0 %v599_v40, %s896_s10 }
 0x1d4   :  { %v589_v26 = vadd.f32 1e-20, %v588_v24 }
 0x1d6   :  { %865 = vlog2.f32 %v589_v26 }
 0x1e3   :  { %v866_v32 = vpop.eup %865 }
 0x1e4   :  { %v591_v34 = vmul.f32 0.6931472, %v866_v32 }
 0x1e6   :  { %v592_v36 = vsub.f32 0.0, %v591_v34 }
 0x241   :  { %v577_v28 = vpop.permute.xlu0 %576 }
 0x242   :  { %v579_v30 = vsel %vm556_vm1, %v577_v28, 0.0 }
 0x243   :  { %580 = vadd.xlane.f32.xlu1 %v579_v30 }
 0x245   :  { %v605_v54 = vpop.permute.xlu0 %604 }
 0x254   :  { %594 = vrot.lane.b32.xlu1 %v592_v36, %s896_s10 }
 0x2cc   :  { %v581_v42 = vpop.xlane.xlu1 %580 }
 0x2cd   :  { %867 = vrcp.f32 %v581_v42 }
 0x2d0   :  { %v595_v46 = vpop.permute.xlu1 %594 }
 0x2da   :  { %v868_v44 = vpop.eup %867 }
 0x2db   :  { %v583_v48 = vmul.f32 %v868_v44, %v862_v14 }
 0x2dd   :  { %v597_v50 = vadd.f32 %v595_v46, %v583_v48 }
 0x2df   :  { %v600_v51 = vsel %vm568_vm0, %v597_v50, -inf }
 0x2e0   :  { %601 = vmax.xlane.f32.xlu1 %v600_v51 }
 0x2e4   :  { %558 = vmax.xlane.f32.xlu1 %v557_v52 }
 0x369   :  { %v602_v56 = vpop.xlane.xlu1 %601 }
 0x36a   :  { %vm603_vm2 = vcmp.ge.f32.partialorder %v597_v50, %v602_v56 }
 0x36b   :  { %v606_v63 = vsel %vm603_vm2, %v605_v54, 6 }
 0x36c   :  { %v607_v1 = vsel %vm568_vm0, %v606_v63, 2147483647 }
 0x36d   :  { %v559_v3 = vpop.xlane.xlu1 %558  ;;  %v609_v5 = vshra.s32 %v607_v1, 16  ;;  %v608_v17 = vand.u32 65535, %v607_v1 }
 0x36e   :  { %v560_v7 = vsub.f32 %v337_v47, %v559_v3 }
 0x36f   :  { %v611_v9 = vcvt.s32.f32 %v609_v5  ;;  %v610_v21 = vcvt.s32.f32 %v608_v17 }
 0x370   :  { %v561_v11 = vmul.f32 1.442695, %v560_v7 }
 0x371   :  { %612 = vmin.xlane.f32.xlu0 %v611_v9 }
 0x372   :  { %869 = vpow2.f32 %v561_v11 }
 0x37f   :  { %v870_v13 = vpop.eup %869 }
 0x380   :  { %v563_v15 = vsel %vm556_vm1, %v870_v13, 0.0 }
 0x381   :  { %564 = vadd.xlane.f32.xlu1 %v563_v15 }
 0x3fa   :  { %v613_v19 = vpop.xlane.xlu0 %612 }
 0x3fb   :  { %vm614_vm3 = vcmp.eq.f32.partialorder %v611_v9, %v613_v19  ;;  %v619_v31 = vcvt.f32.s32 %v613_v19 }
 0x3fc   :  { %v615_v23 = vsel %vm614_vm3, %v610_v21, inf }
 0x3fd   :  { %616 = vmin.xlane.f32.xlu0 %v615_v23  ;;  %v620_v35 = vshll.u32 %v619_v31, 16 }
 0x40a   :  { %v565_v25 = vpop.xlane.xlu1 %564 }
 0x40b   :  { %871 = vrcp.f32 %v565_v25 }
 0x418   :  { %v872_v27 = vpop.eup %871 }
 0x419   :  { %v567_v29 = vmul.f32 %v872_v27, %v870_v13 }
 0x41b   :  { %625 = vst.msk [vmem:[#allocation2] sm:$0xff] %vm556_vm1, %v567_v29 }
 0x486   :  { %v617_v33 = vpop.xlane.xlu0 %616 }
 0x487   :  { %v618_v37 = vcvt.f32.s32 %v617_v33 }
 0x489   :  { %v621_v39 = vadd.s32 %v620_v35, %v618_v37 }
 0x48b   :  { %vm622_vm4 = vcmp.eq.s32.totalorder %v599_v40, %v621_v39 }
 0x48c   :  { %v646_v43 = vsel %vm622_vm4, 1.0, %v897_v41 }
 0x48d   :  { %627 = vrot.lane.b32.xlu0 %v646_v43, %s896_s10 }
 0x4ff   :  { %v628_v45 = vpop.permute.xlu0 %627 }
 0x500   :  { %630 = vst.msk [vmem:[#allocation2] sm:$0xff] %vm568_vm0, %v628_v45 }
 0x501   :  { %884 = shalt.err (!%p881_p4)
}
 0x502   :  { %640 = dma.vmem_to_hbm [thread:$0]  %s638_s11, 128, %s1662_s5, [#allocation3]  }
 0x503   :  { %893 = dma.done.wait [#allocation3], 128  }
 0x504   :  { %894 = vsyncadd [#allocation3], 4294967168 }
 0x505   :  { %644 = vsyncpa [#allocation3], 1 }

</bundles_post_ra>
